<compile_context>
chip_gen: v6e
topology: v6e:2x2x1
jax: 0.10.0
libtpu: 0.0.40
codegen_flags: <defaults>
</compile_context>

<pallas_src>
import functools

import jax
import jax.numpy as jnp
from jax.experimental import pallas as pl
from jax.experimental.pallas import tpu as pltpu


def _scale_predictor_kernel(feat_ref, w_ref, b_ref, out_ref):
    # feat_ref: (TB, P*nz) VMEM tile (lane-packed batch rows, streamed)
    # w_ref:    (P*nz, P*3) VMEM tile (block-diagonal weight, resident)
    # b_ref:    (1, P*3)    VMEM tile (tiled bias + 1 + 1e-12, resident)
    # out_ref:  (TB, P*3)   VMEM tile
    y = jnp.dot(feat_ref[...], w_ref[...], preferred_element_type=jnp.float32)
    y = jnp.maximum(y + b_ref[...], 1e-12)   # == relu(dot + b + 1) + 1e-12
    out_ref[...] = y.astype(out_ref.dtype)


def _default_pack_factor():
    """P=4 on v5e (4x128x128 MXU -> K=128 fills one pass), else P=8 (256-wide)."""
    try:
        kind = jax.devices()[0].device_kind.lower()
    except Exception:
        return 8
    if "v5" in kind and ("lite" in kind or "5e" in kind):
        return 4
    return 8


@functools.partial(jax.jit, static_argnames=("pack", "tb"))
def scale_predictor(feat, w_t, b, *, pack=None, tb=4096):
    """feat: (B, nz), w_t: (nz, 3) (pre-transposed Linear weight), b: (3,) -> (B, 3).

    pack: lane-pack factor P (None -> 4 on v5e, 8 on v6e/v7x).
    tb:   batch tile size in *packed* rows per grid step.  4096 packed rows of
          f32 at P*nz=256 is a 4 MiB feat block; double-buffered feat + out is
          ~12 MiB -> fits the 16 MiB default scoped VMEM on v5e and leaves
          headroom on v6e/v7x, while each step still moves ~4 MiB of feat.
    """
    B, nz = feat.shape
    assert w_t.shape == (nz, 3)
    assert b.shape == (3,)

    P = pack if pack is not None else _default_pack_factor()
    f32 = jnp.float32

    # Host-side parameter repack (tiny, one-off):
    #   bias carries the "+1" and the "+1e-12" clamp floor offset,
    #   weight becomes block-diagonal so packed rows stay independent.
    b_fold = b.astype(f32) + 1.0 + 1e-12
    b_packed = jnp.tile(b_fold.reshape(1, 3), (1, P))                  # (1, P*3)
    w_packed = jnp.kron(jnp.eye(P, dtype=f32), w_t.astype(f32))        # (P*nz, P*3)

    # Host-side batch repack: pad B to a multiple of P, then a free reshape.
    Bp = -(-B // P)              # packed rows
    B_pad = Bp * P
    if B_pad != B:
        feat = jnp.pad(feat, ((0, B_pad - B), (0, 0)))
    feat_packed = feat.reshape(Bp, P * nz)

    K = P * nz
    N = P * 3

    # Tile: full array if it fits in one block, else `tb` (multiple of 8 so the
    # (8,128) sublane constraint holds; ragged last block is handled by Pallas).
    TB = Bp if Bp <= tb else tb
    grid = (pl.cdiv(Bp, TB),)

    itemsize = jnp.dtype(feat.dtype).itemsize
    cost = pl.CostEstimate(
        flops=2 * Bp * K * N,
        transcendentals=0,
        bytes_accessed=Bp * K * itemsize + Bp * N * itemsize + K * N * 4 + N * 4,
    )

    out_packed = pl.pallas_call(
        _scale_predictor_kernel,
        out_shape=jax.ShapeDtypeStruct((Bp, N), feat.dtype),
        grid=grid,
        in_specs=[
            pl.BlockSpec((TB, K), lambda i: (i, 0)),   # feat: streamed per tile
            pl.BlockSpec((K, N), lambda i: (0, 0)),    # block-diag weight: resident
            pl.BlockSpec((1, N), lambda i: (0, 0)),    # tiled bias: resident
        ],
        out_specs=pl.BlockSpec((TB, N), lambda i: (i, 0)),
        compiler_params=pltpu.CompilerParams(
            dimension_semantics=("parallel",),         # batch axis: no reduction
        ),
        cost_estimate=cost,
    )(feat_packed, w_packed, b_packed)

    # Free reshape back to the torch layout, drop batch padding.
    return out_packed.reshape(B_pad, 3)[:B]


def scale_predictor_ref(feat, w_t, b):
    y = feat.astype(jnp.float32) @ w_t.astype(jnp.float32) + b[None, :] + 1.0
    return jnp.maximum(y, 0.0) + 1e-12


if __name__ == "__main__":
    nz = 32

    key = jax.random.PRNGKey(0)
    k_feat, k_w, k_b, k_feat2, k_feat3 = jax.random.split(key, 5)

    # Deterministic parameter init mimicking nn.Linear's uniform(-1/sqrt(nz), 1/sqrt(nz)).
    bound = 1.0 / jnp.sqrt(jnp.float32(nz))
    w = jax.random.uniform(k_w, (3, nz), jnp.float32, -bound, bound)  # torch layout (out, in)
    b = jax.random.uniform(k_b, (3,), jnp.float32, -bound, bound)
    w_t = w.T  # (nz, 3) for the kernel matmul

    # Case 1: small batch, single packed block.
    B1 = 8
    feat1 = jax.random.normal(k_feat, (B1, nz), jnp.float32)
    out1 = jax.block_until_ready(scale_predictor(feat1, w_t, b))
    ref1 = scale_predictor_ref(feat1, w_t, b)
    assert out1.shape == (B1, 3)
    assert jnp.allclose(out1, ref1, atol=1e-5, rtol=1e-5)

    # Case 2: exercise the tiled / multi-block grid path (pack=8, tb=8 -> 3 grid steps).
    B2 = 192
    feat2 = jax.random.normal(k_feat2, (B2, nz), jnp.float32)
    out2 = jax.block_until_ready(scale_predictor(feat2, w_t, b, pack=8, tb=8))
    ref2 = scale_predictor_ref(feat2, w_t, b)
    assert out2.shape == (B2, 3)
    assert jnp.allclose(out2, ref2, atol=1e-5, rtol=1e-5)

    # Case 3: batch not divisible by the pack factor (exercises the padding path).
    B3 = 13
    feat3 = jax.random.normal(k_feat3, (B3, nz), jnp.float32)
    out3 = jax.block_until_ready(scale_predictor(feat3, w_t, b))
    ref3 = scale_predictor_ref(feat3, w_t, b)
    assert out3.shape == (B3, 3)
    assert jnp.allclose(out3, ref3, atol=1e-5, rtol=1e-5)

    print("KERNEL_OK")
</pallas_src>

<mosaic_0001>
module attributes {stable_mosaic.version = 11 : i64} {
  func.func @_scale_predictor_kernel(%arg0: i32, %arg1: memref<1x256xf32, #tpu.memory_space<vmem>>, %arg2: memref<256x24xf32, #tpu.memory_space<vmem>>, %arg3: memref<1x24xf32, #tpu.memory_space<vmem>>, %arg4: memref<1x24xf32, #tpu.memory_space<vmem>>) attributes {dimension_semantics = [#tpu.dimension_semantics<parallel>], iteration_bounds = array<i64: 1>, scalar_prefetch = 0 : i64, scratch_operands = 0 : i64, tpu.core_type = #tpu.core_type<tc>, window_params = [{transform_indices = @transform_0, window_bounds = array<i64: 1, 256>}, {pipeline_mode = #tpu.pipeline_mode<synchronous>, transform_indices = @transform_1, window_bounds = array<i64: 256, 24>}, {pipeline_mode = #tpu.pipeline_mode<synchronous>, transform_indices = @transform_2, window_bounds = array<i64: 1, 24>}, {transform_indices = @transform_3, window_bounds = array<i64: 1, 24>}]} {
    %c0 = arith.constant 0 : index
    %c0_0 = arith.constant 0 : index
    %0 = vector.load %arg1[%c0, %c0_0] : memref<1x256xf32, #tpu.memory_space<vmem>>, vector<1x256xf32>
    %c0_1 = arith.constant 0 : index
    %c0_2 = arith.constant 0 : index
    %1 = vector.load %arg2[%c0_1, %c0_2] : memref<256x24xf32, #tpu.memory_space<vmem>>, vector<256x24xf32>
    %cst = arith.constant dense<0.000000e+00> : vector<1x24xf32>
    %2 = tpu.matmul %0, %1, %cst {dimension_numbers = #tpu.dot_dimension_numbers<[1], [0], [0], [1], [0, 0, 1, 1], [], []>} : vector<1x256xf32>, vector<256x24xf32>, vector<1x24xf32> -> vector<1x24xf32>
    %c0_3 = arith.constant 0 : index
    %c0_4 = arith.constant 0 : index
    %3 = vector.load %arg3[%c0_3, %c0_4] : memref<1x24xf32, #tpu.memory_space<vmem>>, vector<1x24xf32>
    %4 = arith.addf %2, %3 : vector<1x24xf32>
    %cst_5 = arith.constant 9.99999996E-13 : f32
    %5 = vector.broadcast %cst_5 : f32 to vector<1x24xf32>
    %6 = arith.maximumf %4, %5 : vector<1x24xf32>
    %c0_6 = arith.constant 0 : index
    %c0_7 = arith.constant 0 : index
    %7 = vector.load %arg4[%c0_6, %c0_7] : memref<1x24xf32, #tpu.memory_space<vmem>>, vector<1x24xf32>
    tpu.vector_store %arg4[%c0_6, %c0_7], %6 {strides = array<i32>} : memref<1x24xf32, #tpu.memory_space<vmem>>, vector<1x24xf32>,
    return
  }
  func.func @transform_0(%arg0: i32) -> (i32, i32) {
    %c0_i32 = arith.constant 0 : i32
    %c0_i32_0 = arith.constant 0 : i32
    return %arg0, %c0_i32 : i32, i32
  }
  func.func @transform_1(%arg0: i32) -> (i32, i32) {
    %c0_i32 = arith.constant 0 : i32
    %c0_i32_0 = arith.constant 0 : i32
    %c0_i32_1 = arith.constant 0 : i32
    return %c0_i32, %c0_i32_0 : i32, i32
  }
  func.func @transform_2(%arg0: i32) -> (i32, i32) {
    %c0_i32 = arith.constant 0 : i32
    %c0_i32_0 = arith.constant 0 : i32
    %c0_i32_1 = arith.constant 0 : i32
    return %c0_i32, %c0_i32_0 : i32, i32
  }
  func.func @transform_3(%arg0: i32) -> (i32, i32) {
    %c0_i32 = arith.constant 0 : i32
    %c0_i32_0 = arith.constant 0 : i32
    return %arg0, %c0_i32 : i32, i32
  }
}

</mosaic_0001>

<bundles_post_ra>
// kernel: scale_predictor.1
= control target key start
LH: loop header
LB: loop body
LE: loop exit
PB: predicated region body
PF: predicated region fallthrough
CT: control target
= control target key end

     0   :  { %v49_v0 = vlaneseq  ;;  %vm130_vm0 = vcmask 188416   ;;  %s296_s1 = inlined_call_operand.vmem [shape: f32[256,24], index: 1, kind: input, shape index: {}]   ;;  %s297_s0 = inlined_call_operand.vmem [shape: f32[1,256], index: 0, kind: input, shape index: {}]   ;;  %s298_s2 = inlined_call_operand.vmem [shape: f32[1,24], index: 2, kind: input, shape index: {}]   ;;  %s299_s3 = inlined_call_operand.vmem [shape: f32[1,24], index: 3, kind: output, shape index: {}]  }
   0x1   :  { %v46_v1 = vld [vmem:[%s296_s1 + $0xf8] sm:$0xff]  ;;  %v45_v3 = vld [vmem:[%s296_s1 + $0xf0] sm:$0xff]  ;;  %v44_v5 = vld [vmem:[%s296_s1 + $0xe8] sm:$0xff] }
   0x2   :  { %v30_v2 = vld [vmem:[%s296_s1 + $0x78] sm:$0xff]  ;;  %136 = vmatprep.subr.mxu0 %v46_v1  ;;  %v29_v4 = vld [vmem:[%s296_s1 + $0x70] sm:$0xff]  ;;  %v28_v6 = vld [vmem:[%s296_s1 + $0x68] sm:$0xff]  ;;  %v50_v7 = vshrl.u32 %v49_v0, 7 }
   0x3   :  { %137 = vmatpush3.msra.mxu0 %v30_v2  ;;  %v43_v8 = vld [vmem:[%s296_s1 + $0xe0] sm:$0xff]  ;;  %v42_v10 = vld [vmem:[%s296_s1 + $0xd8] sm:$0xff]  ;;  %v41_v13 = vld [vmem:[%s296_s1 + $0xd0] sm:$0xff] }
   0x4   :  { %138 = vmatprep.subr.mxu0 %v45_v3  ;;  %v27_v9 = vld [vmem:[%s296_s1 + $0x60] sm:$0xff]  ;;  %v26_v11 = vld [vmem:[%s296_s1 + $0x58] sm:$0xff]  ;;  %v55_v12 = vsub.s32 1, %v50_v7  ;;  %v25_v14 = vld [vmem:[%s296_s1 + $0x50] sm:$0xff]  ;;  %v51_v33 = vsub.s32 0, %v50_v7 }
   0x5   :  { %139 = vmatpush3.msra.mxu0 %v29_v4  ;;  %v40_v15 = vld [vmem:[%s296_s1 + $0xc8] sm:$0xff]  ;;  %v14_v16 = vld [vmem:[%s297_s0] sm:$0x3]  ;;  %v38_v21 = vld [vmem:[%s296_s1 + $0xb8] sm:$0xff] }
   0x6   :  { %140 = vmatprep.subr.mxu0 %v44_v5  ;;  %v24_v17 = vld [vmem:[%s296_s1 + $0x48] sm:$0xff]  ;;  %v56_v18 = vrot.slane %v14_v16, %v55_v12  ;;  %v39_v19 = vld [vmem:[%s296_s1 + $0xc0] sm:$0xff]  ;;  %v22_v22 = vld [vmem:[%s296_s1 + $0x38] sm:$0xff]  ;;  %v52_v38 = vrot.slane %v14_v16, %v51_v33 }
   0x7   :  { %141 = vmatpush3.msra.mxu0 %v28_v6  ;;  %v23_v20 = vld [vmem:[%s296_s1 + $0x40] sm:$0xff]  ;;  %v37_v23 = vld [vmem:[%s296_s1 + $0xb0] sm:$0xff]  ;;  %v36_v25 = vld [vmem:[%s296_s1 + $0xa8] sm:$0xff] }
   0x8   :  { %142 = vmatprep.subr.mxu0 %v43_v8  ;;  %123 = vmatprep.mubr.f32.mxu0 %v56_v18  ;;  %v21_v24 = vld [vmem:[%s296_s1 + $0x30] sm:$0xff]  ;;  %v20_v26 = vld [vmem:[%s296_s1 + $0x28] sm:$0xff]  ;;  %v35_v27 = vld [vmem:[%s296_s1 + $0xa0] sm:$0xff] }
   0x9   :  { %143 = vmatpush3.msra.mxu0 %v27_v9  ;;  %v19_v28 = vld [vmem:[%s296_s1 + $0x20] sm:$0xff]  ;;  %v34_v29 = vld [vmem:[%s296_s1 + $0x98] sm:$0xff]  ;;  %v33_v31 = vld [vmem:[%s296_s1 + $0x90] sm:$0xff] }
   0xa   :  { %144 = vmatprep.subr.mxu0 %v42_v10  ;;  %v18_v30 = vld [vmem:[%s296_s1 + $0x18] sm:$0xff]  ;;  %v17_v32 = vld [vmem:[%s296_s1 + $0x10] sm:$0xff]  ;;  %v32_v34 = vld [vmem:[%s296_s1 + $0x88] sm:$0xff] }
   0xb   :  { %145 = vmatpush3.msra.mxu0 %v26_v11  ;;  %v16_v35 = vld [vmem:[%s296_s1 + $0x8] sm:$0xff]  ;;  %v31_v36 = vld [vmem:[%s296_s1 + $0x80] sm:$0xff] }
   0xc   :  { %146 = vmatprep.subr.mxu0 %v41_v13  ;;  %v15_v37 = vld [vmem:[%s296_s1] sm:$0xff] }
   0xd   :  { %147 = vmatpush3.msra.mxu0 %v25_v14  ;;  %v47_v40 = vld [vmem:[%s298_s2] sm:$0x1] }
   0xe   :  { %148 = vmatprep.subr.mxu0 %v40_v15 }
   0xf   :  { %149 = vmatpush3.msra.mxu0 %v24_v17 }
  0x10   :  { %150 = vmatprep.subr.mxu0 %v39_v19 }
  0x11   :  { %151 = vmatpush3.msra.mxu0 %v23_v20 }
  0x12   :  { %152 = vmatprep.subr.mxu0 %v38_v21 }
  0x13   :  { %153 = vmatpush3.msra.mxu0 %v22_v22 }
  0x14   :  { %154 = vmatprep.subr.mxu0 %v37_v23 }
  0x15   :  { %155 = vmatpush3.msra.mxu0 %v21_v24 }
  0x16   :  { %156 = vmatprep.subr.mxu0 %v36_v25 }
  0x17   :  { %157 = vmatpush3.msra.mxu0 %v20_v26 }
  0x18   :  { %158 = vmatprep.subr.mxu0 %v35_v27 }
  0x19   :  { %159 = vmatpush3.msra.mxu0 %v19_v28 }
  0x1a   :  { %160 = vmatprep.subr.mxu0 %v34_v29 }
  0x1b   :  { %161 = vmatpush3.msra.mxu0 %v18_v30 }
  0x1c   :  { %162 = vmatprep.subr.mxu0 %v33_v31 }
  0x1d   :  { %163 = vmatpush3.msra.mxu0 %v17_v32 }
  0x1e   :  { %164 = vmatprep.subr.mxu0 %v32_v34 }
  0x1f   :  { %165 = vmatpush3.msra.mxu0 %v16_v35 }
  0x20   :  { %166 = vmatprep.subr.mxu0 %v31_v36 }
  0x21   :  { %167 = vmatpush3.msra.mxu0 %v15_v37 }
  0x22   :  { %124 = vmatmul.mubr.f32.vlgmr.msra.gmra.mxu0 %v52_v38 }
  0xe2   :  { %v168_v39 = vpop.f32.mrf.mxu0 }
  0xe4   :  { %v169_v41 = vpop.f32.mrf.mxu0 }
  0xe5   :  { %v170_v42 = vadd.f32 %v169_v41, %v168_v39 }
  0xe7   :  { %v126_v43 = vadd.f32 %v170_v42, %v47_v40 }
  0xe9   :  { %v129_v44 = vmax.f32 %v126_v43, 1e-12 }
  0xeb   :  { %131 = vst.msk [vmem:[%s299_s3] sm:$0x1] %vm130_vm0, %v129_v44 }

</bundles_post_ra>
